<compile_context>
chip_gen: v5e
topology: v5e:2x2
jax: 0.10.0
libtpu: 0.0.40
codegen_flags: <defaults>
</compile_context>

<pallas_src>
import functools

import jax
import jax.numpy as jnp
from jax import lax
from jax.experimental import pallas as pl
from jax.experimental.pallas import tpu as pltpu


def _static_int_pow(x, n):
    """x**n for a small static non-negative integer n (VALU multiplies only)."""
    if n == 0:
        return jnp.ones_like(x)
    acc = x
    for _ in range(n - 1):
        acc = acc * x
    return acc


def _focal_loss_kernel(logits_ref, labels_ref, out_ref, *,
                       gamma_int, gamma_f, alpha,
                       seq_len, tile_s, tiles_per_chunk, need_mask):
    c = pl.program_id(0)          # parallel chunk axis (megacore on v7x)
    t = pl.program_id(1)          # serial (reduction) seq-tile axis

    @pl.when(t == 0)
    def _():
        out_ref[...] = jnp.zeros_like(out_ref)

    x = logits_ref[...].astype(jnp.float32)             # (B, C, tile_s)

    # F.log_softmax(logits) with no dim -> legacy default dim=0 for 3-D input.
    m = jnp.max(x, axis=0, keepdims=True)
    lse = jnp.log(jnp.sum(jnp.exp(x - m), axis=0, keepdims=True)) + m
    log_p = x - lse                                      # (B, C, tile_s)

    # pt = onehot * log_p without materializing a float one-hot (single vsel).
    lbl = labels_ref[...]                                # (B, tile_s) int32
    class_ids = lax.broadcasted_iota(jnp.int32, x.shape, 1)
    pt = jnp.where(class_ids == lbl[:, None, :], log_p, 0.0)

    sub_pt = 1.0 - pt
    if gamma_int is not None:
        w = _static_int_pow(sub_pt, gamma_int)           # gamma=2 -> square (VALU)
    else:
        w = sub_pt ** gamma_f                            # general fallback (EUP)
    fl = (-alpha) * w * log_p                            # (B, C, tile_s)

    # Lane-wide partial: reduce over batch (vreg adds) and class (sublane/XLU).
    psum = jnp.sum(jnp.sum(fl, axis=0), axis=0, keepdims=True)   # (1, tile_s)

    if need_mask:
        seq0 = (c * tiles_per_chunk + t) * tile_s
        lane = lax.broadcasted_iota(jnp.int32, (1, tile_s), 1)
        psum = jnp.where(seq0 + lane < seq_len, psum, 0.0)

    # Accumulate into row 0 of the resident (8, tile_s) output block; the final
    # cross-lane reduce is deferred to a tiny XLA sum in the wrapper.
    out_ref[0:1, :] = out_ref[0:1, :] + psum


def _pick_tile_s(B, C, S, itemsize, max_tile_s=None):
    """Largest multiple-of-128 seq tile whose (logits+labels) block is ~2 MiB,
    keeping the double-buffered working set far below the 32 MiB scoped-VMEM
    limit requested below (safe on v7x's 64 MiB physical VMEM as well)."""
    bytes_per_col = B * C * itemsize + B * 4             # logits + int32 labels
    target_block_bytes = 2 * 1024 * 1024
    t = (target_block_bytes // bytes_per_col) // 128 * 128
    t = max(128, t)
    t = min(t, 32768)                                    # bound f32 temporaries
    t = min(t, pl.cdiv(S, 128) * 128)                    # never exceed padded S
    if max_tile_s is not None:
        t = max(128, min(t, max_tile_s // 128 * 128))
    return int(t)


def focal_loss(logits, labels, *, gamma=2, alpha=1.0, size_average=True,
               max_tile_s=None):
    """logits: (B, C, S) float (f32 or bf16); labels: (B, S) int class ids."""
    B, C, S = logits.shape
    assert labels.shape == (B, S)
    labels = labels.astype(jnp.int32)

    # NOTE: bandwidth-bound callers (esp. v5e) can pass bf16 logits; the kernel
    # upcasts to f32 internally.
    itemsize = jnp.dtype(logits.dtype).itemsize
    tile_s = _pick_tile_s(B, C, S, itemsize, max_tile_s)

    num_tiles = pl.cdiv(S, tile_s)
    # Leading "parallel" chunk axis so v7x's two TensorCores can split the
    # work; only enabled when the tile padding it introduces is small.
    if num_tiles >= 2 and (num_tiles % 2 == 0 or num_tiles >= 8):
        num_chunks = 2
    else:
        num_chunks = 1
    tiles_per_chunk = pl.cdiv(num_tiles, num_chunks)
    s_pad = num_chunks * tiles_per_chunk * tile_s

    if s_pad != S:
        logits = jnp.pad(logits, ((0, 0), (0, 0), (0, s_pad - S)))
        labels = jnp.pad(labels, ((0, 0), (0, s_pad - S)))

    g = float(gamma)
    gamma_int = int(g) if (g.is_integer() and 0 <= g <= 16) else None

    kernel = functools.partial(
        _focal_loss_kernel,
        gamma_int=gamma_int, gamma_f=g, alpha=float(alpha),
        seq_len=S, tile_s=tile_s, tiles_per_chunk=tiles_per_chunk,
        need_mask=(s_pad != S))

    partials = pl.pallas_call(
        kernel,
        out_shape=jax.ShapeDtypeStruct((num_chunks * 8, tile_s), jnp.float32),
        grid_spec=pltpu.PrefetchScalarGridSpec(
            num_scalar_prefetch=0,
            grid=(num_chunks, tiles_per_chunk),
            in_specs=[
                # With small C (<8) each (C, tile_s) vreg tile is partly sublane
                # padding; the large lane tile compensates for that waste.
                pl.BlockSpec((B, C, tile_s),
                             lambda c, t: (0, 0, c * tiles_per_chunk + t)),
                pl.BlockSpec((B, tile_s),
                             lambda c, t: (0, c * tiles_per_chunk + t)),
            ],
            out_specs=pl.BlockSpec((8, tile_s), lambda c, t: (c, 0)),
        ),
        compiler_params=pltpu.CompilerParams(
            dimension_semantics=("parallel", "arbitrary"),
            vmem_limit_bytes=32 * 1024 * 1024),
    )(logits, labels)

    total = jnp.sum(partials)
    if size_average:
        return total / jnp.float32(B * C * S)
    return total


def _focal_loss_ref(logits, labels, *, gamma=2, alpha=1.0, size_average=True):
    """Pure-JAX reference mirroring the PyTorch module (log_softmax dim=0)."""
    B, C, S = logits.shape
    log_p = jax.nn.log_softmax(logits.astype(jnp.float32), axis=0)
    onehot = (labels[:, None, :] ==
              lax.broadcasted_iota(jnp.int32, (B, C, S), 1)).astype(jnp.float32)
    pt = onehot * log_p
    fl = -alpha * (1.0 - pt) ** gamma * log_p
    return fl.mean() if size_average else fl.sum()


if __name__ == "__main__":
    key = jax.random.PRNGKey(0)
    k1, k2 = jax.random.split(key)

    # Small shape matching the module's (batch, labels_length, seq_length).
    B, C, S = 2, 4, 8
    logits = jax.random.normal(k1, (B, C, S), dtype=jnp.float32)
    labels = jax.random.randint(k2, (B, S), 0, C, dtype=jnp.int32)

    out = focal_loss(logits, labels, gamma=2, alpha=1.0, size_average=True)
    out = jax.block_until_ready(out)
    ref = _focal_loss_ref(logits, labels, gamma=2, alpha=1.0, size_average=True)
    assert jnp.allclose(out, ref, rtol=1e-5, atol=1e-5), (out, ref)

    # Also exercise the multi-tile, two-chunk, padded/masked path.
    B2, C2, S2 = 2, 4, 1000
    lg2 = jax.random.normal(k1, (B2, C2, S2), dtype=jnp.float32)
    lb2 = jax.random.randint(k2, (B2, S2), 0, C2, dtype=jnp.int32)
    out2 = jax.block_until_ready(focal_loss(lg2, lb2, max_tile_s=128))
    ref2 = _focal_loss_ref(lg2, lb2)
    assert jnp.allclose(out2, ref2, rtol=1e-5, atol=1e-5), (out2, ref2)

    print("KERNEL_OK")
</pallas_src>

<mosaic_0001>
module attributes {stable_mosaic.version = 11 : i64} {
  func.func @_focal_loss_kernel(%arg0: i32, %arg1: i32, %arg2: memref<2x4x128xf32, #tpu.memory_space<vmem>>, %arg3: memref<2x128xi32, #tpu.memory_space<vmem>>, %arg4: memref<8x128xf32, #tpu.memory_space<vmem>>) attributes {dimension_semantics = [#tpu.dimension_semantics<parallel>, #tpu.dimension_semantics<arbitrary>], iteration_bounds = array<i64: 1, 1>, scalar_prefetch = 0 : i64, scratch_operands = 0 : i64, tpu.core_type = #tpu.core_type<tc>, window_params = [{transform_indices = @transform_0, window_bounds = array<i64: 2, 4, 128>}, {transform_indices = @transform_1, window_bounds = array<i64: 2, 128>}, {transform_indices = @transform_2, window_bounds = array<i64: 8, 128>}]} {
    %c0_i32 = arith.constant 0 : i32
    %0 = arith.cmpi eq, %arg1, %c0_i32 : i32
    %1 = arith.extui %0 : i1 to i32
    %c0_i32_0 = arith.constant 0 : i32
    %2 = arith.cmpi ne, %1, %c0_i32_0 : i32
    scf.if %2 {
      %cst_16 = arith.constant 0.000000e+00 : f32
      %44 = vector.broadcast %cst_16 : f32 to vector<8x128xf32>
      %c0_17 = arith.constant 0 : index
      %c0_18 = arith.constant 0 : index
      %45 = vector.load %arg4[%c0_17, %c0_18] : memref<8x128xf32, #tpu.memory_space<vmem>>, vector<8x128xf32>
      tpu.vector_store %arg4[%c0_17, %c0_18], %44 {strides = array<i32>} : memref<8x128xf32, #tpu.memory_space<vmem>>, vector<8x128xf32>,
    } else {
    }
    %c0 = arith.constant 0 : index
    %c0_1 = arith.constant 0 : index
    %c0_2 = arith.constant 0 : index
    %3 = vector.load %arg2[%c0, %c0_1, %c0_2] : memref<2x4x128xf32, #tpu.memory_space<vmem>>, vector<2x4x128xf32>
    %cst = arith.constant dense<0xFF800000> : vector<4x128xf32>
    %4 = vector.multi_reduction <maximumf>, %3, %cst [0] : vector<2x4x128xf32> to vector<4x128xf32>
    %5 = vector.shape_cast %4 : vector<4x128xf32> to vector<1x4x128xf32>
    %6 = vector.broadcast %5 : vector<1x4x128xf32> to vector<2x4x128xf32>
    %7 = arith.subf %3, %6 : vector<2x4x128xf32>
    %8 = math.exp %7 : vector<2x4x128xf32>
    %cst_3 = arith.constant dense<0.000000e+00> : vector<4x128xf32>
    %9 = vector.multi_reduction <add>, %8, %cst_3 [0] : vector<2x4x128xf32> to vector<4x128xf32>
    %10 = vector.shape_cast %9 : vector<4x128xf32> to vector<1x4x128xf32>
    %11 = math.log %10 : vector<1x4x128xf32>
    %12 = arith.addf %11, %5 : vector<1x4x128xf32>
    %13 = vector.broadcast %12 : vector<1x4x128xf32> to vector<2x4x128xf32>
    %14 = arith.subf %3, %13 : vector<2x4x128xf32>
    %c0_4 = arith.constant 0 : index
    %c0_5 = arith.constant 0 : index
    %15 = vector.load %arg3[%c0_4, %c0_5] : memref<2x128xi32, #tpu.memory_space<vmem>>, vector<2x128xi32>
    %16 = tpu.iota {dimensions = array<i32: 1>} : vector<2x4x128xi32>
    %17 = vector.shape_cast %15 : vector<2x128xi32> to vector<2x1x128xi32>
    %18 = vector.broadcast %17 : vector<2x1x128xi32> to vector<2x4x128xi32>
    %19 = arith.cmpi eq, %16, %18 : vector<2x4x128xi32>
    %cst_6 = arith.constant 0.000000e+00 : f32
    %20 = vector.broadcast %cst_6 : f32 to vector<2x4x128xf32>
    %21 = arith.select %19, %14, %20 : vector<2x4x128xi1>, vector<2x4x128xf32>
    %cst_7 = arith.constant 1.000000e+00 : f32
    %22 = vector.broadcast %cst_7 : f32 to vector<2x4x128xf32>
    %23 = arith.subf %22, %21 : vector<2x4x128xf32>
    %24 = arith.mulf %23, %23 : vector<2x4x128xf32>
    %cst_8 = arith.constant -1.000000e+00 : f32
    %25 = vector.broadcast %cst_8 : f32 to vector<2x4x128xf32>
    %26 = arith.mulf %25, %24 : vector<2x4x128xf32>
    %27 = arith.mulf %26, %14 : vector<2x4x128xf32>
    %cst_9 = arith.constant dense<0.000000e+00> : vector<4x128xf32>
    %28 = vector.multi_reduction <add>, %27, %cst_9 [0] : vector<2x4x128xf32> to vector<4x128xf32>
    %cst_10 = arith.constant dense<0.000000e+00> : vector<128xf32>
    %29 = vector.multi_reduction <add>, %28, %cst_10 [0] : vector<4x128xf32> to vector<128xf32>
    %30 = vector.shape_cast %29 : vector<128xf32> to vector<1x128xf32>
    %c1_i32 = arith.constant 1 : i32
    %31 = arith.muli %arg0, %c1_i32 : i32
    %32 = arith.addi %31, %arg1 : i32
    %c128_i32 = arith.constant 128 : i32
    %33 = arith.muli %32, %c128_i32 : i32
    %34 = tpu.iota {dimensions = array<i32: 1>} : vector<1x128xi32>
    %35 = vector.broadcast %33 : i32 to vector<1x128xi32>
    %36 = arith.addi %35, %34 : vector<1x128xi32>
    %c8_i32 = arith.constant 8 : i32
    %37 = vector.broadcast %c8_i32 : i32 to vector<1x128xi32>
    %38 = arith.cmpi slt, %36, %37 : vector<1x128xi32>
    %cst_11 = arith.constant 0.000000e+00 : f32
    %39 = vector.broadcast %cst_11 : f32 to vector<1x128xf32>
    %40 = arith.select %38, %30, %39 : vector<1x128xi1>, vector<1x128xf32>
    %c0_12 = arith.constant 0 : index
    %c0_13 = arith.constant 0 : index
    %41 = vector.load %arg4[%c0_12, %c0_13] : memref<8x128xf32, #tpu.memory_space<vmem>>, vector<1x128xf32>
    %42 = arith.addf %41, %40 : vector<1x128xf32>
    %c0_14 = arith.constant 0 : index
    %c0_15 = arith.constant 0 : index
    %43 = vector.load %arg4[%c0_14, %c0_15] : memref<8x128xf32, #tpu.memory_space<vmem>>, vector<1x128xf32>
    tpu.vector_store %arg4[%c0_14, %c0_15], %42 {strides = array<i32>} : memref<8x128xf32, #tpu.memory_space<vmem>>, vector<1x128xf32>,
    return
  }
  func.func @transform_0(%arg0: i32, %arg1: i32) -> (i32, i32, i32) {
    %c1_i32 = arith.constant 1 : i32
    %0 = arith.muli %arg0, %c1_i32 : i32
    %1 = arith.addi %0, %arg1 : i32
    %c0_i32 = arith.constant 0 : i32
    %c0_i32_0 = arith.constant 0 : i32
    %c0_i32_1 = arith.constant 0 : i32
    return %c0_i32, %c0_i32_0, %1 : i32, i32, i32
  }
  func.func @transform_1(%arg0: i32, %arg1: i32) -> (i32, i32) {
    %c1_i32 = arith.constant 1 : i32
    %0 = arith.muli %arg0, %c1_i32 : i32
    %1 = arith.addi %0, %arg1 : i32
    %c0_i32 = arith.constant 0 : i32
    %c0_i32_0 = arith.constant 0 : i32
    return %c0_i32, %1 : i32, i32
  }
  func.func @transform_2(%arg0: i32, %arg1: i32) -> (i32, i32) {
    %c0_i32 = arith.constant 0 : i32
    %c0_i32_0 = arith.constant 0 : i32
    return %arg0, %c0_i32 : i32, i32
  }
}

</mosaic_0001>

<bundles_post_ra>
// kernel: tpu_custom_call.1
= control target key start
LH: loop header
LB: loop body
LE: loop exit
PB: predicated region body
PF: predicated region fallthrough
CT: control target
= control target key end

     0   :  { %7 = vsyncpa [#allocation3], 0  ;;  %s259_s0 = inlined_call_operand.hbm [shape: f32[2,4,128], index: 0, kind: input, shape index: {}]   ;;  %s260_s1 = inlined_call_operand.hbm [shape: s32[2,128], index: 1, kind: input, shape index: {}]   ;;  %s261_s2 = inlined_call_operand.hbm [shape: f32[8,128], index: 2, kind: output, shape index: {}]  }
   0x1   :  { %8 = vsyncpa [#allocation6], 0 }
   0x2   :  { %9 = vsyncpa [#allocation4], 0  ;;  %s17_s11 = sshll.u32 %s259_s0, 4  ;;  %s222_s12 = smov [#allocation2]   ;;  %s18_s11 = int_to_ptr.hbm [resolvable:$true] %s17_s11 }
   0x3   :  { %s19_s13 = sshll.u32 %s222_s12, 4  ;;  %s34_s16 = sshll.u32 %s260_s1, 4  ;;  %s20_s13 = int_to_ptr.vmem [resolvable:$true] %s19_s13  ;;  %s35_s16 = int_to_ptr.hbm [resolvable:$true] %s34_s16 }
   0x4   :  { %s223_s17 = smov 64   ;;  %s224_s18 = smov 4  }
   0x5   :  { %25 = dma.hbm_to_vmem [thread:$0]  %s18_s11, 128, %s20_s13, [#allocation3], %s223_s17, %s223_s17, %s224_s18  }
   0x6   :  { %s225_s19 = smov [#allocation5]  }
   0x7   :  { %s36_s20 = sshll.u32 %s225_s19, 4  ;;  %s37_s20 = int_to_ptr.vmem [resolvable:$true] %s36_s20 }
   0x8   :  { %39 = dma.hbm_to_vmem [thread:$0]  %s35_s16, 32, %s37_s20, [#allocation6]  }
   0x9   :  { %216 = dma.done.wait [#allocation3], 128  }
   0xa   :  { %217 = vsyncadd [#allocation3], 4294967168 }
   0xb   :  { %218 = dma.done.wait [#allocation6], 32  }
   0xc   :  { %219 = vsyncadd [#allocation6], 4294967264  ;;  %v226_v0 = vmov 0.0   ;;  %vm57_vm0 = vcmask 1043456   ;;  %v55_v1 = vld [vmem:[#allocation2] sm:$0xf]  ;;  %v76_v16 = vlaneseq }
   0xd   :  { %54 = vst [vmem:[#allocation7] sm:$0xff] %v226_v0  ;;  %v56_v2 = vld [vmem:[#allocation2 + $0x4] sm:$0xf]  ;;  %v58_v3 = vsel %vm57_vm0, %v55_v1, -inf  ;;  %v75_v15 = vld [vmem:[#allocation5] sm:$0x3] }
   0xe   :  { %v59_v4 = vsel %vm57_vm0, %v56_v2, -inf  ;;  %v78_v17 = vrot.slane %v75_v15, 1  ;;  %v77_v19 = vshrl.u32 %v76_v16, 7  ;;  %v79_v20 = vperm.slane %v75_v15, 0  ;;  %s227_s0 = smov [#allocation7]   ;;  %s121_s23 = sshll.u32 %s261_s2, 4  ;;  %s122_s23 = int_to_ptr.hbm [resolvable:$true] %s121_s23 }
   0xf   :  { %v60_v5 = vmax.f32 %v58_v3, %v59_v4  ;;  %v106_v43 = vand.u32 127, %v76_v16  ;;  %s119_s1 = sshll.u32 %s227_s0, 4  ;;  %s120_s1 = int_to_ptr.vmem [resolvable:$true] %s119_s1 }
  0x10   :  { %v80_v21 = vperm.slane %v78_v17, 0  ;;  %vm81_vm1 = vcmp.eq.s32.totalorder %v77_v19, %v79_v20 }
  0x11   :  { %v61_v6 = vsub.f32 %v55_v1, %v60_v5  ;;  %v62_v7 = vsub.f32 %v56_v2, %v60_v5  ;;  %vm109_vm3 = vcmp.lt.s32.totalorder %v106_v43, 8 }
  0x12   :  { %vm82_vm2 = vcmp.eq.s32.totalorder %v77_v19, %v80_v21 }
  0x13   :  { %v63_v8 = vmul.f32 1.442695, %v61_v6  ;;  %v65_v9 = vmul.f32 1.442695, %v62_v7 }
  0x14   :  { %v111_v47 = vld [vmem:[#allocation7] sm:$0x1] }
  0x15   :  { %138 = vpow2.f32 %v63_v8 }
  0x16   :  { %140 = vpow2.f32 %v65_v9 }
  0x1b   :  { %v139_v10 = vpop.eup %138 }
  0x1c   :  { %v141_v11 = vpop.eup %140  ;;  %v67_v12 = vsel %vm57_vm0, %v139_v10, 0.0 }
  0x1d   :  { %v68_v13 = vsel %vm57_vm0, %v141_v11, 0.0 }
  0x1e   :  { %v69_v14 = vadd.f32 %v68_v13, %v67_v12 }
  0x20   :  { %142 = vlog2.f32 %v69_v14 }
  0x26   :  { %v143_v18 = vpop.eup %142 }
  0x27   :  { %v71_v22 = vmul.f32 0.6931472, %v143_v18 }
  0x29   :  { %v72_v23 = vadd.f32 %v71_v22, %v60_v5 }
  0x2b   :  { %v73_v24 = vsub.f32 %v55_v1, %v72_v23  ;;  %v74_v25 = vsub.f32 %v56_v2, %v72_v23 }
  0x2d   :  { %v83_v26 = vsel %vm81_vm1, %v73_v24, 0.0  ;;  %v84_v27 = vsel %vm82_vm2, %v74_v25, 0.0 }
  0x2e   :  { %v85_v28 = vsub.f32 1.0, %v83_v26  ;;  %v86_v29 = vsub.f32 1.0, %v84_v27 }
  0x30   :  { %v87_v30 = vmul.f32 %v85_v28, %v85_v28  ;;  %v88_v31 = vmul.f32 %v86_v29, %v86_v29 }
  0x32   :  { %v89_v32 = vmul.f32 -1.0, %v87_v30  ;;  %v90_v33 = vmul.f32 -1.0, %v88_v31 }
  0x34   :  { %v91_v34 = vmul.f32 %v89_v32, %v73_v24  ;;  %v92_v35 = vmul.f32 %v90_v33, %v74_v25 }
  0x36   :  { %v93_v36 = vsel %vm57_vm0, %v91_v34, 0.0  ;;  %v94_v37 = vsel %vm57_vm0, %v92_v35, 0.0 }
  0x37   :  { %v95_v38 = vadd.f32 %v94_v37, %v93_v36 }
  0x39   :  { %v96_v39 = vsel %vm57_vm0, %v95_v38, 0.0 }
  0x3a   :  { %v97_v40 = vrot.slane %v96_v39, 4 }
  0x3c   :  { %v98_v41 = vadd.f32 %v97_v40, %v96_v39 }
  0x3e   :  { %v99_v42 = vrot.slane %v98_v41, 2 }
  0x40   :  { %v100_v44 = vadd.f32 %v99_v42, %v98_v41 }
  0x42   :  { %v101_v45 = vrot.slane %v100_v44, 1 }
  0x44   :  { %v102_v46 = vadd.f32 %v101_v45, %v100_v44 }
  0x46   :  { %v110_v48 = vsel %vm109_vm3, %v102_v46, 0.0 }
  0x47   :  { %v112_v49 = vadd.f32 %v111_v47, %v110_v48 }
  0x49   :  { %113 = vst [vmem:[#allocation7] sm:$0x1] %v112_v49 }
  0x4a   :  { %124 = dma.vmem_to_hbm [thread:$0]  %s120_s1, 128, %s122_s23, [#allocation4]  }
  0x4b   :  { %220 = dma.done.wait [#allocation4], 128  }
  0x4c   :  { %221 = vsyncadd [#allocation4], 4294967168 }
  0x4d   :  { %129 = vsyncpa [#allocation3], 1 }
  0x4e   :  { %130 = vsyncpa [#allocation6], 1 }
  0x4f   :  { %131 = vsyncpa [#allocation4], 1 }

</bundles_post_ra>
